<compile_context>
chip_gen: v6e
topology: v6e:2x2x1
jax: 0.10.0
libtpu: 0.0.40
codegen_flags: <defaults>
</compile_context>

<pallas_src>
import functools

import jax
import jax.numpy as jnp
from jax.experimental import pallas as pl
from jax.experimental.pallas import tpu as pltpu


def _round_up(x, m):
    return (x + m - 1) // m * m


def _largest_divisor_leq(n, cap):
    cap = max(1, min(n, cap))
    for d in range(cap, 0, -1):
        if n % d == 0:
            return d
    return 1


def _sdpa_kernel(*refs, scale, has_bias, store_attn):
    """Per-grid-step refs:
         q_ref    : [BT, TQ,  D   ]  input dtype
         k_ref    : [BT, LKP, D   ]
         v_ref    : [BT, LKP, DVP ]
         bias_ref : [TQ, LKP]  f32   (optional additive 0/-inf mask+pad bias)
         out_ref  : [BT, TQ,  DVP ]
         attn_ref : [BT, TQ,  LKP ]  (optional)
    """
    q_ref, k_ref, v_ref = refs[0], refs[1], refs[2]
    pos = 3
    bias_ref = None
    if has_bias:
        bias_ref = refs[pos]
        pos += 1
    out_ref = refs[pos]
    pos += 1
    attn_ref = refs[pos] if store_attn else None

    # Fold 1/temperature into q (the small operand); keep the input dtype for the MXU.
    q = q_ref[...]
    q = q * jnp.asarray(scale, dtype=q.dtype)
    k = k_ref[...]
    v = v_ref[...]

    # scores = q @ k^T (batched, contraction on last dims -> no explicit transpose),
    # accumulated in f32 on the MXU.
    scores = jax.lax.dot_general(
        q, k,
        dimension_numbers=(((2,), (2,)), ((0,), (0,))),
        preferred_element_type=jnp.float32,
    )  # [BT, TQ, LKP] f32

    if has_bias:
        scores = scores + bias_ref[...][None, :, :]

    # Numerically stable softmax over the key axis (torch dim=2).
    m = jnp.max(scores, axis=-1, keepdims=True)
    e = jnp.exp(scores - m)
    denom = jnp.sum(e, axis=-1, keepdims=True)
    attn = e * pl.reciprocal(denom, approx=True)

    if store_attn:
        attn_ref[...] = attn.astype(attn_ref.dtype)

    # out = attn @ v — feed the MXU in v's dtype (bf16-native when inputs are bf16).
    out = jax.lax.dot_general(
        attn.astype(v.dtype), v,
        dimension_numbers=(((2,), (1,)), ((0,), (0,))),
        preferred_element_type=jnp.float32,
    )  # [BT, TQ, DVP]
    out_ref[...] = out.astype(out_ref.dtype)


def scaled_dot_product_attention(q, k, v, temperature, mask=None, *, return_attn=True):
    """q: [B, Lq, D], k: [B, Lk, D], v: [B, Lk, Dv], mask: [Lq, Lk] bool (True = masked)."""
    B, Lq, D = q.shape
    Bk, Lk, Dk = k.shape
    Bv, Lkv, Dv = v.shape
    assert Bk == B and Bv == B and Dk == D and Lkv == Lk
    if mask is not None:
        assert mask.shape == (Lq, Lk)

    # Lane-dense (128-aligned) last dims for stored tiles.
    LKP = _round_up(Lk, 128)
    DVP = _round_up(Dv, 128)

    # Lq tiling + batch folding per grid step.
    TQ = 128 if (Lq % 128 == 0) else Lq
    BT = _largest_divisor_leq(B, max(1, 256 // TQ))

    k_p = jnp.pad(k, ((0, 0), (0, LKP - Lk), (0, 0))) if LKP != Lk else k
    if LKP != Lk or DVP != Dv:
        v_p = jnp.pad(v, ((0, 0), (0, LKP - Lk), (0, DVP - Dv)))
    else:
        v_p = v

    # Additive 0/-inf bias handles both the user mask and padded key columns.
    need_bias = (mask is not None) or (LKP != Lk)
    inputs = [q, k_p, v_p]
    in_specs = [
        pl.BlockSpec((BT, TQ, D), lambda bi, qi: (bi, qi, 0)),
        pl.BlockSpec((BT, LKP, D), lambda bi, qi: (bi, 0, 0)),
        pl.BlockSpec((BT, LKP, DVP), lambda bi, qi: (bi, 0, 0)),
    ]
    if need_bias:
        if mask is not None:
            core = jnp.where(mask.astype(bool), -jnp.inf, 0.0).astype(jnp.float32)
        else:
            core = jnp.zeros((Lq, Lk), jnp.float32)
        if LKP != Lk:
            pad_cols = jnp.full((Lq, LKP - Lk), -jnp.inf, dtype=jnp.float32)
            bias = jnp.concatenate([core, pad_cols], axis=1)
        else:
            bias = core
        inputs.append(bias)
        in_specs.append(pl.BlockSpec((TQ, LKP), lambda bi, qi: (qi, 0)))

    out_shapes = [jax.ShapeDtypeStruct((B, Lq, DVP), q.dtype)]
    out_specs = [pl.BlockSpec((BT, TQ, DVP), lambda bi, qi: (bi, qi, 0))]
    if return_attn:
        out_shapes.append(jax.ShapeDtypeStruct((B, Lq, LKP), q.dtype))
        out_specs.append(pl.BlockSpec((BT, TQ, LKP), lambda bi, qi: (bi, qi, 0)))

    grid = (B // BT, Lq // TQ)

    # VMEM budget: double-buffered blocks + f32 scores/exp intermediates.
    itm = jnp.dtype(q.dtype).itemsize
    blk_bytes = (
        2 * BT * TQ * D * itm
        + 2 * BT * LKP * D * itm
        + 2 * BT * LKP * DVP * itm
        + (2 * TQ * LKP * 4 if need_bias else 0)
        + 2 * BT * TQ * DVP * itm
        + (2 * BT * TQ * LKP * itm if return_attn else 0)
        + 2 * BT * TQ * LKP * 4
    )
    vmem_limit = int(min(48 * 1024 * 1024, max(32 * 1024 * 1024, 2 * blk_bytes)))

    cost = pl.CostEstimate(
        flops=2 * B * Lq * LKP * (D + DVP),
        transcendentals=B * Lq * LKP,
        bytes_accessed=int(
            q.size * itm + k_p.size * itm + v_p.size * itm
            + B * Lq * DVP * itm
            + (B * Lq * LKP * itm if return_attn else 0)
            + (bias.size * 4 if need_bias else 0)
        ),
    )

    kernel = functools.partial(
        _sdpa_kernel,
        scale=1.0 / float(temperature),
        has_bias=need_bias,
        store_attn=return_attn,
    )

    results = pl.pallas_call(
        kernel,
        out_shape=tuple(out_shapes),
        grid_spec=pltpu.PrefetchScalarGridSpec(
            num_scalar_prefetch=0,
            grid=grid,
            in_specs=in_specs,
            out_specs=tuple(out_specs),
        ),
        compiler_params=pltpu.CompilerParams(
            dimension_semantics=("parallel", "parallel"),
            vmem_limit_bytes=vmem_limit,
        ),
        cost_estimate=cost,
    )(*inputs)

    out = results[0]
    if DVP != Dv:
        out = out[:, :, :Dv]
    if not return_attn:
        return out
    attn = results[1]
    if LKP != Lk:
        attn = attn[:, :, :Lk]
    return out, attn


def _reference(q, k, v, temperature, mask=None):
    qf, kf, vf = (x.astype(jnp.float32) for x in (q, k, v))
    attn = jnp.einsum("bqd,bkd->bqk", qf, kf) / temperature
    if mask is not None:
        attn = jnp.where(mask[None, :, :], -jnp.inf, attn)
    attn = jax.nn.softmax(attn, axis=2)
    out = jnp.einsum("bqk,bkd->bqd", attn, vf)
    return out, attn


if __name__ == "__main__":
    key = jax.random.PRNGKey(0)

    # --- case 1: small GST-style shapes, f32, with and without mask ---
    B, Lq, Lk, D, Dv = 2, 8, 8, 32, 32
    temperature = float(D) ** 0.5
    kq, kk, kv = jax.random.split(key, 3)
    q = jax.random.normal(kq, (B, Lq, D), dtype=jnp.float32)
    k = jax.random.normal(kk, (B, Lk, D), dtype=jnp.float32)
    v = jax.random.normal(kv, (B, Lk, Dv), dtype=jnp.float32)

    row = jax.lax.broadcasted_iota(jnp.int32, (Lq, Lk), 0)
    col = jax.lax.broadcasted_iota(jnp.int32, (Lq, Lk), 1)
    mask = col > row  # True = masked (causal-style), broadcast over batch

    out0, attn0 = scaled_dot_product_attention(q, k, v, temperature, mask=None)
    ref_out0, ref_attn0 = _reference(q, k, v, temperature, None)

    out1, attn1 = scaled_dot_product_attention(q, k, v, temperature, mask=mask)
    ref_out1, ref_attn1 = _reference(q, k, v, temperature, mask)

    out2 = scaled_dot_product_attention(q, k, v, temperature, mask=mask, return_attn=False)

    # --- case 2: bf16 inputs (MXU-native path) ---
    qb, kb, vb = q.astype(jnp.bfloat16), k.astype(jnp.bfloat16), v.astype(jnp.bfloat16)
    out3, attn3 = scaled_dot_product_attention(qb, kb, vb, temperature, mask=mask)
    ref_out3, ref_attn3 = _reference(qb, kb, vb, temperature, mask)

    # --- case 3: already 128-aligned Lk/Dv, no mask (no-bias / no-padding path) ---
    B2, Lq2, Lk2, D2, Dv2 = 2, 8, 128, 32, 128
    kq2, kk2, kv2 = jax.random.split(jax.random.PRNGKey(1), 3)
    q2 = jax.random.normal(kq2, (B2, Lq2, D2), dtype=jnp.float32)
    k2 = jax.random.normal(kk2, (B2, Lk2, D2), dtype=jnp.float32)
    v2 = jax.random.normal(kv2, (B2, Lk2, Dv2), dtype=jnp.float32)
    out4, attn4 = scaled_dot_product_attention(q2, k2, v2, float(D2) ** 0.5)
    ref_out4, ref_attn4 = _reference(q2, k2, v2, float(D2) ** 0.5, None)

    jax.block_until_ready((out0, attn0, out1, attn1, out2, out3, attn3, out4, attn4))

    tol = dict(atol=1e-2, rtol=1e-2)  # approx reciprocal in the softmax denominator
    assert jnp.allclose(out0, ref_out0, **tol)
    assert jnp.allclose(attn0, ref_attn0, **tol)
    assert jnp.allclose(out1, ref_out1, **tol)
    assert jnp.allclose(attn1, ref_attn1, **tol)
    assert jnp.allclose(out2, ref_out1, **tol)
    assert jnp.allclose(out4, ref_out4, **tol)
    assert jnp.allclose(attn4, ref_attn4, **tol)

    btol = dict(atol=1e-1, rtol=1e-1)  # bf16 rounding of q/k/v/attn
    assert jnp.allclose(out3.astype(jnp.float32), ref_out3, **btol)
    assert jnp.allclose(attn3.astype(jnp.float32), ref_attn3, **btol)

    print("KERNEL_OK")
</pallas_src>

<mosaic_0001>
module attributes {stable_mosaic.version = 11 : i64} {
  func.func @_sdpa_kernel(%arg0: i32, %arg1: i32, %arg2: memref<2x8x32xf32, #tpu.memory_space<vmem>>, %arg3: memref<2x128x32xf32, #tpu.memory_space<vmem>>, %arg4: memref<2x128x128xf32, #tpu.memory_space<vmem>>, %arg5: memref<8x128xf32, #tpu.memory_space<vmem>>, %arg6: memref<2x8x128xf32, #tpu.memory_space<vmem>>, %arg7: memref<2x8x128xf32, #tpu.memory_space<vmem>>) attributes {dimension_semantics = [#tpu.dimension_semantics<parallel>, #tpu.dimension_semantics<parallel>], iteration_bounds = array<i64: 1, 1>, scalar_prefetch = 0 : i64, scratch_operands = 0 : i64, tpu.core_type = #tpu.core_type<tc>, window_params = [{transform_indices = @transform_0, window_bounds = array<i64: 2, 8, 32>}, {transform_indices = @transform_1, window_bounds = array<i64: 2, 128, 32>}, {transform_indices = @transform_2, window_bounds = array<i64: 2, 128, 128>}, {transform_indices = @transform_3, window_bounds = array<i64: 8, 128>}, {transform_indices = @transform_4, window_bounds = array<i64: 2, 8, 128>}, {transform_indices = @transform_5, window_bounds = array<i64: 2, 8, 128>}]} {
    %c0 = arith.constant 0 : index
    %c0_0 = arith.constant 0 : index
    %c0_1 = arith.constant 0 : index
    %0 = vector.load %arg2[%c0, %c0_0, %c0_1] : memref<2x8x32xf32, #tpu.memory_space<vmem>>, vector<2x8x32xf32>
    %cst = arith.constant 0.176776692 : f32
    %1 = vector.broadcast %cst : f32 to vector<2x8x32xf32>
    %2 = arith.mulf %0, %1 : vector<2x8x32xf32>
    %c0_2 = arith.constant 0 : index
    %c0_3 = arith.constant 0 : index
    %c0_4 = arith.constant 0 : index
    %3 = vector.load %arg3[%c0_2, %c0_3, %c0_4] : memref<2x128x32xf32, #tpu.memory_space<vmem>>, vector<2x128x32xf32>
    %c0_5 = arith.constant 0 : index
    %c0_6 = arith.constant 0 : index
    %c0_7 = arith.constant 0 : index
    %4 = vector.load %arg4[%c0_5, %c0_6, %c0_7] : memref<2x128x128xf32, #tpu.memory_space<vmem>>, vector<2x128x128xf32>
    %cst_8 = arith.constant dense<0.000000e+00> : vector<2x8x128xf32>
    %5 = tpu.matmul %2, %3, %cst_8 {dimension_numbers = #tpu.dot_dimension_numbers<[2], [2], [1], [1], [0, 0, 0, 1, 1, 1], [0], [0]>} : vector<2x8x32xf32>, vector<2x128x32xf32>, vector<2x8x128xf32> -> vector<2x8x128xf32>
    %c0_9 = arith.constant 0 : index
    %c0_10 = arith.constant 0 : index
    %6 = vector.load %arg5[%c0_9, %c0_10] : memref<8x128xf32, #tpu.memory_space<vmem>>, vector<8x128xf32>
    %7 = vector.shape_cast %6 : vector<8x128xf32> to vector<1x8x128xf32>
    %8 = vector.broadcast %7 : vector<1x8x128xf32> to vector<2x8x128xf32>
    %9 = arith.addf %5, %8 : vector<2x8x128xf32>
    %cst_11 = arith.constant dense<0xFF800000> : vector<2x8xf32>
    %10 = vector.multi_reduction <maximumf>, %9, %cst_11 [2] : vector<2x8x128xf32> to vector<2x8xf32>
    %11 = vector.shape_cast %10 : vector<2x8xf32> to vector<2x8x1xf32>
    %12 = vector.broadcast %11 : vector<2x8x1xf32> to vector<2x8x128xf32>
    %13 = arith.subf %9, %12 : vector<2x8x128xf32>
    %14 = math.exp %13 : vector<2x8x128xf32>
    %cst_12 = arith.constant dense<0.000000e+00> : vector<2x8xf32>
    %15 = vector.multi_reduction <add>, %14, %cst_12 [2] : vector<2x8x128xf32> to vector<2x8xf32>
    %16 = vector.shape_cast %15 : vector<2x8xf32> to vector<2x8x1xf32>
    %17 = tpu.reciprocal %16 {approx = true} : vector<2x8x1xf32> -> vector<2x8x1xf32>
    %18 = vector.broadcast %17 : vector<2x8x1xf32> to vector<2x8x128xf32>
    %19 = arith.mulf %14, %18 : vector<2x8x128xf32>
    %c0_13 = arith.constant 0 : index
    %c0_14 = arith.constant 0 : index
    %c0_15 = arith.constant 0 : index
    %20 = vector.load %arg7[%c0_13, %c0_14, %c0_15] : memref<2x8x128xf32, #tpu.memory_space<vmem>>, vector<2x8x128xf32>
    tpu.vector_store %arg7[%c0_13, %c0_14, %c0_15], %19 {strides = array<i32>} : memref<2x8x128xf32, #tpu.memory_space<vmem>>, vector<2x8x128xf32>,
    %cst_16 = arith.constant dense<0.000000e+00> : vector<2x8x128xf32>
    %21 = tpu.matmul %19, %4, %cst_16 {dimension_numbers = #tpu.dot_dimension_numbers<[2], [1], [1], [2], [0, 0, 0, 1, 1, 2], [0], [0]>} : vector<2x8x128xf32>, vector<2x128x128xf32>, vector<2x8x128xf32> -> vector<2x8x128xf32>
    %c0_17 = arith.constant 0 : index
    %c0_18 = arith.constant 0 : index
    %c0_19 = arith.constant 0 : index
    %22 = vector.load %arg6[%c0_17, %c0_18, %c0_19] : memref<2x8x128xf32, #tpu.memory_space<vmem>>, vector<2x8x128xf32>
    tpu.vector_store %arg6[%c0_17, %c0_18, %c0_19], %21 {strides = array<i32>} : memref<2x8x128xf32, #tpu.memory_space<vmem>>, vector<2x8x128xf32>,
    return
  }
  func.func @transform_0(%arg0: i32, %arg1: i32) -> (i32, i32, i32) {
    %c0_i32 = arith.constant 0 : i32
    %c0_i32_0 = arith.constant 0 : i32
    return %arg0, %arg1, %c0_i32 : i32, i32, i32
  }
  func.func @transform_1(%arg0: i32, %arg1: i32) -> (i32, i32, i32) {
    %c0_i32 = arith.constant 0 : i32
    %c0_i32_0 = arith.constant 0 : i32
    %c0_i32_1 = arith.constant 0 : i32
    return %arg0, %c0_i32, %c0_i32_0 : i32, i32, i32
  }
  func.func @transform_2(%arg0: i32, %arg1: i32) -> (i32, i32, i32) {
    %c0_i32 = arith.constant 0 : i32
    %c0_i32_0 = arith.constant 0 : i32
    %c0_i32_1 = arith.constant 0 : i32
    return %arg0, %c0_i32, %c0_i32_0 : i32, i32, i32
  }
  func.func @transform_3(%arg0: i32, %arg1: i32) -> (i32, i32) {
    %c0_i32 = arith.constant 0 : i32
    %c0_i32_0 = arith.constant 0 : i32
    return %arg1, %c0_i32 : i32, i32
  }
  func.func @transform_4(%arg0: i32, %arg1: i32) -> (i32, i32, i32) {
    %c0_i32 = arith.constant 0 : i32
    %c0_i32_0 = arith.constant 0 : i32
    return %arg0, %arg1, %c0_i32 : i32, i32, i32
  }
  func.func @transform_5(%arg0: i32, %arg1: i32) -> (i32, i32, i32) {
    %c0_i32 = arith.constant 0 : i32
    %c0_i32_0 = arith.constant 0 : i32
    return %arg0, %arg1, %c0_i32 : i32, i32, i32
  }
}

</mosaic_0001>

<bundles_post_ra>
// kernel: tpu_custom_call.1
= control target key start
LH: loop header
LB: loop body
LE: loop exit
PB: predicated region body
PF: predicated region fallthrough
CT: control target
= control target key end

     0   :  { %11 = vsyncpa [#allocation3], 0  ;;  %vm90_vm0 = vcmask 261120   ;;  %v827_v2 = vmov 0.0   ;;  %vm828_vm1 = vmmov 0   ;;  %s1180_s0 = inlined_call_operand.vmem [shape: f32[2,8,32], index: 0, kind: input, shape index: {}]   ;;  %s1181_s1 = inlined_call_operand.vmem [shape: f32[2,128,32], index: 1, kind: input, shape index: {}]   ;;  %s1182_s2 = inlined_call_operand.vmem [shape: f32[2,128,128], index: 2, kind: input, shape index: {}]   ;;  %s1183_s3 = inlined_call_operand.vmem [shape: f32[8,128], index: 3, kind: input, shape index: {}]   ;;  %s1184_s4 = inlined_call_operand.hbm [shape: f32[2,8,128], index: 4, kind: output, shape index: {0}]   ;;  %s1185_s5 = inlined_call_operand.hbm [shape: f32[2,8,128], index: 5, kind: output, shape index: {1}]  }
   0x1   :  { %v40_v0 = vld [vmem:[%s1181_s1 + $0x78] sm:$0xff]  ;;  %629 = vmatprep.subr.mxu0 %v827_v2  ;;  %664 = vmatprep.subr.mxu1 %v827_v2  ;;  %v39_v3 = vld [vmem:[%s1181_s1 + $0x70] sm:$0xff]  ;;  %v38_v5 = vld [vmem:[%s1181_s1 + $0x68] sm:$0xff] }
   0x2   :  { %v56_v1 = vld [vmem:[%s1181_s1 + $0xf8] sm:$0xff]  ;;  %630 = vmatpush3.xpose.msk.msra.mxu0 %vm90_vm0, %v40_v0  ;;  %v55_v4 = vld [vmem:[%s1181_s1 + $0xf0] sm:$0xff]  ;;  %661 = vmatprep.mubr.msk.f32.mxu0 %vm828_vm1, %v827_v2  ;;  %v54_v6 = vld [vmem:[%s1181_s1 + $0xe8] sm:$0xff] }
   0x3   :  { %665 = vmatpush3.xpose.msk.msra.mxu1 %vm90_vm0, %v56_v1  ;;  %631 = vmatprep.subr.mxu0 %v827_v2  ;;  %v37_v7 = vld [vmem:[%s1181_s1 + $0x60] sm:$0xff] }
   0x4   :  { %666 = vmatprep.subr.mxu1 %v827_v2  ;;  %696 = vmatprep.mubr.msk.f32.mxu1 %vm828_vm1, %v827_v2  ;;  %v53_v8 = vld [vmem:[%s1181_s1 + $0xe0] sm:$0xff] }
   0x6   :  { %632 = vmatpush3.xpose.msk.msra.mxu0 %vm90_vm0, %v39_v3 }
   0x7   :  { %667 = vmatpush3.xpose.msk.msra.mxu1 %vm90_vm0, %v55_v4  ;;  %633 = vmatprep.subr.mxu0 %v827_v2 }
   0x8   :  { %668 = vmatprep.subr.mxu1 %v827_v2 }
   0xa   :  { %634 = vmatpush3.xpose.msk.msra.mxu0 %vm90_vm0, %v38_v5 }
   0xb   :  { %669 = vmatpush3.xpose.msk.msra.mxu1 %vm90_vm0, %v54_v6  ;;  %635 = vmatprep.subr.mxu0 %v827_v2 }
   0xc   :  { %670 = vmatprep.subr.mxu1 %v827_v2 }
   0xd   :  { %12 = vsyncpa [#allocation5], 0  ;;  %v36_v9 = vld [vmem:[%s1181_s1 + $0x58] sm:$0xff]  ;;  %v35_v11 = vld [vmem:[%s1181_s1 + $0x50] sm:$0xff]  ;;  %s829_s18 = smov [#allocation4]  }
   0xe   :  { %636 = vmatpush3.xpose.msk.msra.mxu0 %vm90_vm0, %v37_v7  ;;  %v52_v10 = vld [vmem:[%s1181_s1 + $0xd8] sm:$0xff]  ;;  %v51_v12 = vld [vmem:[%s1181_s1 + $0xd0] sm:$0xff]  ;;  %v34_v13 = vld [vmem:[%s1181_s1 + $0x48] sm:$0xff]  ;;  %s512_s19 = sshll.u32 %s829_s18, 4  ;;  %s513_s19 = int_to_ptr.vmem [resolvable:$true] %s512_s19 }
   0xf   :  { %671 = vmatpush3.xpose.msk.msra.mxu1 %vm90_vm0, %v53_v8  ;;  %637 = vmatprep.subr.mxu0 %v827_v2  ;;  %v50_v14 = vld [vmem:[%s1181_s1 + $0xc8] sm:$0xff]  ;;  %v33_v15 = vld [vmem:[%s1181_s1 + $0x40] sm:$0xff]  ;;  %v32_v17 = vld [vmem:[%s1181_s1 + $0x38] sm:$0xff]  ;;  %p788_p1 = scmp.lt.s32.totalorder %s513_s19, %s513_s19 }
  0x10   :  { %672 = vmatprep.subr.mxu1 %v827_v2  ;;  %v49_v16 = vld [vmem:[%s1181_s1 + $0xc0] sm:$0xff]  ;;  %v48_v18 = vld [vmem:[%s1181_s1 + $0xb8] sm:$0xff]  ;;  %v31_v19 = vld [vmem:[%s1181_s1 + $0x30] sm:$0xff] }
  0x11   :  { %v47_v20 = vld [vmem:[%s1181_s1 + $0xb0] sm:$0xff]  ;;  %v30_v21 = vld [vmem:[%s1181_s1 + $0x28] sm:$0xff]  ;;  %v29_v23 = vld [vmem:[%s1181_s1 + $0x20] sm:$0xff] }
  0x12   :  { %638 = vmatpush3.xpose.msk.msra.mxu0 %vm90_vm0, %v36_v9  ;;  %v46_v22 = vld [vmem:[%s1181_s1 + $0xa8] sm:$0xff]  ;;  %v45_v24 = vld [vmem:[%s1181_s1 + $0xa0] sm:$0xff]  ;;  %v28_v25 = vld [vmem:[%s1181_s1 + $0x18] sm:$0xff] }
  0x13   :  { %673 = vmatpush3.xpose.msk.msra.mxu1 %vm90_vm0, %v52_v10  ;;  %639 = vmatprep.subr.mxu0 %v827_v2  ;;  %v44_v26 = vld [vmem:[%s1181_s1 + $0x98] sm:$0xff]  ;;  %v27_v27 = vld [vmem:[%s1181_s1 + $0x10] sm:$0xff]  ;;  %v26_v29 = vld [vmem:[%s1181_s1 + $0x8] sm:$0xff] }
  0x14   :  { %674 = vmatprep.subr.mxu1 %v827_v2  ;;  %v43_v28 = vld [vmem:[%s1181_s1 + $0x90] sm:$0xff]  ;;  %v42_v30 = vld [vmem:[%s1181_s1 + $0x88] sm:$0xff]  ;;  %v21_v31 = vld [vmem:[%s1180_s0] sm:$0xff] }
  0x15   :  { %v22_v32 = vld [vmem:[%s1180_s0 + $0x8] sm:$0xff]  ;;  %v25_v33 = vld [vmem:[%s1181_s1] sm:$0xff]  ;;  %v23_v35 = vmul.f32 0.17677669, %v21_v31  ;;  %v72_v44 = vld [vmem:[%s1182_s2 + $0x78] sm:$0xff] }
  0x16   :  { %640 = vmatpush3.xpose.msk.msra.mxu0 %vm90_vm0, %v35_v11  ;;  %v41_v34 = vld [vmem:[%s1181_s1 + $0x80] sm:$0xff]  ;;  %v24_v36 = vmul.f32 0.17677669, %v22_v32  ;;  %v71_v45 = vld [vmem:[%s1182_s2 + $0x70] sm:$0xff]  ;;  %v88_v46 = vld [vmem:[%s1182_s2 + $0xf8] sm:$0xff] }
  0x17   :  { %675 = vmatpush3.xpose.msk.msra.mxu1 %vm90_vm0, %v51_v12  ;;  %641 = vmatprep.subr.mxu0 %v827_v2  ;;  %v89_v37 = vld [vmem:[%s1183_s3] sm:$0xff]  ;;  %v87_v47 = vld [vmem:[%s1182_s2 + $0xf0] sm:$0xff]  ;;  %v70_v48 = vld [vmem:[%s1182_s2 + $0x68] sm:$0xff] }
  0x18   :  { %676 = vmatprep.subr.mxu1 %v827_v2  ;;  %v86_v49 = vld [vmem:[%s1182_s2 + $0xe8] sm:$0xff]  ;;  %v69_v50 = vld [vmem:[%s1182_s2 + $0x60] sm:$0xff]  ;;  %v68_v52 = vld [vmem:[%s1182_s2 + $0x58] sm:$0xff] }
  0x19   :  { %v85_v51 = vld [vmem:[%s1182_s2 + $0xe0] sm:$0xff]  ;;  %v84_v53 = vld [vmem:[%s1182_s2 + $0xd8] sm:$0xff]  ;;  %v67_v54 = vld [vmem:[%s1182_s2 + $0x50] sm:$0xff] }
  0x1a   :  { %642 = vmatpush3.xpose.msk.msra.mxu0 %vm90_vm0, %v34_v13  ;;  %v83_v55 = vld [vmem:[%s1182_s2 + $0xd0] sm:$0xff]  ;;  %v66_v56 = vld [vmem:[%s1182_s2 + $0x48] sm:$0xff]  ;;  %v65_v57 = vld [vmem:[%s1182_s2 + $0x40] sm:$0xff] }
  0x1b   :  { %677 = vmatpush3.xpose.msk.msra.mxu1 %vm90_vm0, %v50_v14  ;;  %643 = vmatprep.subr.mxu0 %v827_v2  ;;  %v64_v3 = vld [vmem:[%s1182_s2 + $0x38] sm:$0xff]  ;;  %v82_v4 = vld [vmem:[%s1182_s2 + $0xc8] sm:$0xff]  ;;  %v63_v5 = vld [vmem:[%s1182_s2 + $0x30] sm:$0xff] }
  0x1c   :  { %678 = vmatprep.subr.mxu1 %v827_v2  ;;  %v81_v6 = vld [vmem:[%s1182_s2 + $0xc0] sm:$0xff]  ;;  %v62_v7 = vld [vmem:[%s1182_s2 + $0x28] sm:$0xff]  ;;  %v80_v8 = vld [vmem:[%s1182_s2 + $0xb8] sm:$0xff] }
  0x1d   :  { %v61_v9 = vld [vmem:[%s1182_s2 + $0x20] sm:$0xff]  ;;  %v79_v10 = vld [vmem:[%s1182_s2 + $0xb0] sm:$0xff]  ;;  %v60_v11 = vld [vmem:[%s1182_s2 + $0x18] sm:$0xff] }
  0x1e   :  { %644 = vmatpush3.xpose.msk.msra.mxu0 %vm90_vm0, %v33_v15  ;;  %v78_v12 = vld [vmem:[%s1182_s2 + $0xa8] sm:$0xff]  ;;  %v59_v13 = vld [vmem:[%s1182_s2 + $0x10] sm:$0xff]  ;;  %v77_v14 = vld [vmem:[%s1182_s2 + $0xa0] sm:$0xff] }
  0x1f   :  { %679 = vmatpush3.xpose.msk.msra.mxu1 %vm90_vm0, %v49_v16  ;;  %645 = vmatprep.subr.mxu0 %v827_v2  ;;  %v58_v15 = vld [vmem:[%s1182_s2 + $0x8] sm:$0xff]  ;;  %v76_v16 = vld [vmem:[%s1182_s2 + $0x98] sm:$0xff] }
  0x20   :  { %680 = vmatprep.subr.mxu1 %v827_v2 }
  0x22   :  { %646 = vmatpush3.xpose.msk.msra.mxu0 %vm90_vm0, %v32_v17  ;;  %v57_v17 = vld [vmem:[%s1182_s2] sm:$0xff] }
  0x23   :  { %681 = vmatpush3.xpose.msk.msra.mxu1 %vm90_vm0, %v48_v18  ;;  %647 = vmatprep.subr.mxu0 %v827_v2  ;;  %v75_v18 = vld [vmem:[%s1182_s2 + $0x90] sm:$0xff] }
  0x24   :  { %682 = vmatprep.subr.mxu1 %v827_v2 }
  0x26   :  { %648 = vmatpush3.xpose.msk.msra.mxu0 %vm90_vm0, %v31_v19  ;;  %v74_v19 = vld [vmem:[%s1182_s2 + $0x88] sm:$0xff] }
  0x27   :  { %683 = vmatpush3.xpose.msk.msra.mxu1 %vm90_vm0, %v47_v20  ;;  %649 = vmatprep.subr.mxu0 %v827_v2  ;;  %v73_v20 = vld [vmem:[%s1182_s2 + $0x80] sm:$0xff]  ;;  %s783_s2 = scalar_lea.vmem %s513_s19, 256 }
  0x28   :  { %684 = vmatprep.subr.mxu1 %v827_v2  ;;  %p784_p0 = scmp.ne.s32.totalorder %s513_s19, %s783_s2  ;;  %p789_p2 = scmp.lt.s32.totalorder %s783_s2, %s783_s2 }
  0x2a   :  { %650 = vmatpush3.xpose.msk.msra.mxu0 %vm90_vm0, %v30_v21  ;;  %p790_p3 = por %p789_p2, %p788_p1 }
  0x2b   :  { %685 = vmatpush3.xpose.msk.msra.mxu1 %vm90_vm0, %v46_v22  ;;  %651 = vmatprep.subr.mxu0 %v827_v2 }
  0x2c   :  { %686 = vmatprep.subr.mxu1 %v827_v2  ;;  %p791_p4 = pnand %p790_p3, %p784_p0 }
  0x2e   :  { %652 = vmatpush3.xpose.msk.msra.mxu0 %vm90_vm0, %v29_v23 }
  0x2f   :  { %687 = vmatpush3.xpose.msk.msra.mxu1 %vm90_vm0, %v45_v24  ;;  %653 = vmatprep.subr.mxu0 %v827_v2 }
  0x30   :  { %688 = vmatprep.subr.mxu1 %v827_v2 }
  0x32   :  { %654 = vmatpush3.xpose.msk.msra.mxu0 %vm90_vm0, %v28_v25 }
  0x33   :  { %689 = vmatpush3.xpose.msk.msra.mxu1 %vm90_vm0, %v44_v26  ;;  %655 = vmatprep.subr.mxu0 %v827_v2 }
  0x34   :  { %690 = vmatprep.subr.mxu1 %v827_v2 }
  0x36   :  { %656 = vmatpush3.xpose.msk.msra.mxu0 %vm90_vm0, %v27_v27 }
  0x37   :  { %691 = vmatpush3.xpose.msk.msra.mxu1 %vm90_vm0, %v43_v28  ;;  %657 = vmatprep.subr.mxu0 %v827_v2 }
  0x38   :  { %692 = vmatprep.subr.mxu1 %v827_v2 }
  0x3a   :  { %658 = vmatpush3.xpose.msk.msra.mxu0 %vm90_vm0, %v26_v29 }
  0x3b   :  { %693 = vmatpush3.xpose.msk.msra.mxu1 %vm90_vm0, %v42_v30  ;;  %659 = vmatprep.subr.mxu0 %v827_v2 }
  0x3c   :  { %694 = vmatprep.subr.mxu1 %v827_v2 }
  0x3e   :  { %660 = vmatpush3.xpose.msk.msra.mxu0 %vm90_vm0, %v25_v33 }
  0x3f   :  { %695 = vmatpush3.xpose.msk.msra.mxu1 %vm90_vm0, %v41_v34  ;;  %699 = vmatprep.subr.mxu0 %v827_v2 }
  0x40   :  { %734 = vmatprep.subr.mxu1 %v827_v2 }
  0x41   :  { %662 = vmatmul.mubr.msk.f32.vlgmr.msra.gmra.mxu0 %vm90_vm0, %v23_v35 }
  0x42   :  { %697 = vmatmul.mubr.msk.f32.vlgmr.msra.gmra.mxu1 %vm90_vm0, %v24_v36  ;;  %731 = vmatprep.mubr.msk.f32.mxu0 %vm828_vm1, %v827_v2 }
  0x43   :  { %766 = vmatprep.mubr.msk.f32.mxu1 %vm828_vm1, %v827_v2  ;;  %700 = vmatpush3.msra.mxu0 %v72_v44 }
  0x44   :  { %701 = vmatprep.subr.mxu0 %v827_v2  ;;  %735 = vmatpush3.msra.mxu1 %v88_v46 }
  0x45   :  { %702 = vmatpush3.msra.mxu0 %v71_v45  ;;  %736 = vmatprep.subr.mxu1 %v827_v2 }
  0x46   :  { %703 = vmatprep.subr.mxu0 %v827_v2  ;;  %737 = vmatpush3.msra.mxu1 %v87_v47 }
  0x47   :  { %704 = vmatpush3.msra.mxu0 %v70_v48  ;;  %738 = vmatprep.subr.mxu1 %v827_v2 }
  0x48   :  { %705 = vmatprep.subr.mxu0 %v827_v2  ;;  %739 = vmatpush3.msra.mxu1 %v86_v49 }
  0x49   :  { %706 = vmatpush3.msra.mxu0 %v69_v50  ;;  %740 = vmatprep.subr.mxu1 %v827_v2 }
  0x4a   :  { %707 = vmatprep.subr.mxu0 %v827_v2  ;;  %741 = vmatpush3.msra.mxu1 %v85_v51 }
  0x4b   :  { %708 = vmatpush3.msra.mxu0 %v68_v52  ;;  %742 = vmatprep.subr.mxu1 %v827_v2 }
  0x4c   :  { %709 = vmatprep.subr.mxu0 %v827_v2  ;;  %743 = vmatpush3.msra.mxu1 %v84_v53 }
  0x4d   :  { %710 = vmatpush3.msra.mxu0 %v67_v54  ;;  %744 = vmatprep.subr.mxu1 %v827_v2 }
  0x4e   :  { %711 = vmatprep.subr.mxu0 %v827_v2  ;;  %745 = vmatpush3.msra.mxu1 %v83_v55 }
  0x4f   :  { %712 = vmatpush3.msra.mxu0 %v66_v56  ;;  %746 = vmatprep.subr.mxu1 %v827_v2 }
  0x50   :  { %713 = vmatprep.subr.mxu0 %v827_v2  ;;  %747 = vmatpush3.msra.mxu1 %v82_v4 }
  0x51   :  { %714 = vmatpush3.msra.mxu0 %v65_v57  ;;  %748 = vmatprep.subr.mxu1 %v827_v2 }
  0x52   :  { %715 = vmatprep.subr.mxu0 %v827_v2  ;;  %749 = vmatpush3.msra.mxu1 %v81_v6 }
  0x53   :  { %716 = vmatpush3.msra.mxu0 %v64_v3  ;;  %750 = vmatprep.subr.mxu1 %v827_v2 }
  0x54   :  { %717 = vmatprep.subr.mxu0 %v827_v2  ;;  %751 = vmatpush3.msra.mxu1 %v80_v8 }
  0x55   :  { %718 = vmatpush3.msra.mxu0 %v63_v5  ;;  %752 = vmatprep.subr.mxu1 %v827_v2 }
  0x56   :  { %719 = vmatprep.subr.mxu0 %v827_v2  ;;  %753 = vmatpush3.msra.mxu1 %v79_v10 }
  0x57   :  { %720 = vmatpush3.msra.mxu0 %v62_v7  ;;  %754 = vmatprep.subr.mxu1 %v827_v2 }
  0x58   :  { %721 = vmatprep.subr.mxu0 %v827_v2  ;;  %755 = vmatpush3.msra.mxu1 %v78_v12 }
  0x59   :  { %722 = vmatpush3.msra.mxu0 %v61_v9  ;;  %756 = vmatprep.subr.mxu1 %v827_v2 }
  0x5a   :  { %723 = vmatprep.subr.mxu0 %v827_v2  ;;  %757 = vmatpush3.msra.mxu1 %v77_v14 }
  0x5b   :  { %724 = vmatpush3.msra.mxu0 %v60_v11  ;;  %758 = vmatprep.subr.mxu1 %v827_v2 }
  0x5c   :  { %725 = vmatprep.subr.mxu0 %v827_v2  ;;  %759 = vmatpush3.msra.mxu1 %v76_v16 }
  0x5d   :  { %726 = vmatpush3.msra.mxu0 %v59_v13  ;;  %760 = vmatprep.subr.mxu1 %v827_v2 }
  0x5e   :  { %727 = vmatprep.subr.mxu0 %v827_v2  ;;  %761 = vmatpush3.msra.mxu1 %v75_v18 }
  0x5f   :  { %728 = vmatpush3.msra.mxu0 %v58_v15  ;;  %762 = vmatprep.subr.mxu1 %v827_v2 }
  0x60   :  { %729 = vmatprep.subr.mxu0 %v827_v2  ;;  %763 = vmatpush3.msra.mxu1 %v74_v19 }
  0x61   :  { %730 = vmatpush3.msra.mxu0 %v57_v17  ;;  %764 = vmatprep.subr.mxu1 %v827_v2 }
  0x62   :  { %765 = vmatpush3.msra.mxu1 %v73_v20 }
 0x101   :  { %v208_v38 = vpop.f32.mrf.mxu0 }
 0x102   :  { %v329_v39 = vpop.f32.mrf.mxu1  ;;  %v209_v40 = vadd.f32 %v208_v38, %v89_v37 }
 0x103   :  { %v663_v41 = vpop.f32.mrf.mxu0  ;;  %v330_v43 = vadd.f32 %v329_v39, %v89_v37 }
 0x104   :  { %v698_v42 = vpop.f32.mrf.mxu1  ;;  %333 = vmax.xlane.f32.xlu0 %v209_v40 }
 0x108   :  { %335 = vmax.xlane.f32.xlu0 %v330_v43 }
 0x18d   :  { %v334_v58 = vpop.xlane.xlu0 %333 }
 0x18e   :  { %v337_v59 = vsub.f32 %v209_v40, %v334_v58 }
 0x190   :  { %v339_v60 = vmul.f32 1.442695, %v337_v59 }
 0x191   :  { %v336_v61 = vpop.xlane.xlu0 %335 }
 0x192   :  { %775 = vpow2.f32 %v339_v60  ;;  %v338_v62 = vsub.f32 %v330_v43, %v336_v61 }
 0x194   :  { %v341_v63 = vmul.f32 1.442695, %v338_v62 }
 0x196   :  { %777 = vpow2.f32 %v341_v63 }
 0x19f   :  { %v776_v0 = vpop.eup %775 }
 0x1a0   :  { %343 = vadd.xlane.f32.xlu1 %v776_v0 }
 0x1a3   :  { %v1100_v1 = vpop.eup %777 }
 0x1a4   :  { %345 = vadd.xlane.f32.xlu1 %v1100_v1 }
 0x229   :  { %v344_v21 = vpop.xlane.xlu1 %343 }
 0x22a   :  { %779 = vrcp.f32 %v344_v21 }
 0x22d   :  { %v346_v22 = vpop.xlane.xlu1 %345 }
 0x22e   :  { %781 = vrcp.f32 %v346_v22 }
 0x237   :  { %v780_v23 = vpop.eup %779 }
 0x238   :  { %v349_v24 = vmul.f32 %v780_v23, %v776_v0 }
 0x23a   :  { %732 = vmatmul.mubr.f32.vlgmr.msra.gmra.mxu0 %v349_v24  ;;  %351 = vst [vmem:[#allocation4] sm:$0xff] %v349_v24 }
 0x23b   :  { %v782_v25 = vpop.eup %781 }
 0x23c   :  { %v350_v26 = vmul.f32 %v782_v25, %v1100_v1 }
 0x23e   :  { %767 = vmatmul.mubr.f32.vlgmr.msra.gmra.mxu1 %v350_v26  ;;  %352 = vst [vmem:[#allocation4 + $0x8] sm:$0xff] %v350_v26 }
 0x23f   :  { %794 = shalt.err (!%p791_p4)
}
 0x240   :  { %s830_s20 = smov 128   ;;  %s831_s21 = smov 8  }
 0x241   :  { %518 = dma.vmem_to_hbm [thread:$0]  %s513_s19, 256, %s1185_s5, [#allocation5], %s830_s20, %s830_s20, %s831_s21  }
 0x242   :  { %s832_s24 = smov [#allocation2]  }
 0x243   :  { %s500_s25 = sshll.u32 %s832_s24, 4  ;;  %s501_s25 = int_to_ptr.vmem [resolvable:$true] %s500_s25 }
 0x244   :  { %s803_s26 = scalar_lea.vmem %s501_s25, 256  ;;  %p808_p6 = scmp.lt.s32.totalorder %s501_s25, %s501_s25 }
 0x245   :  { %p804_p5 = scmp.ne.s32.totalorder %s501_s25, %s803_s26  ;;  %p809_p7 = scmp.lt.s32.totalorder %s803_s26, %s803_s26 }
 0x247   :  { %p810_p8 = por %p809_p7, %p808_p6 }
 0x249   :  { %p811_p9 = pnand %p810_p8, %p804_p5 }
 0x2fa   :  { %v419_v2 = vpop.f32.mrf.mxu0 }
 0x2fb   :  { %493 = vst [vmem:[#allocation2] sm:$0xff] %v419_v2 }
 0x2fc   :  { %v733_v27 = vpop.f32.mrf.mxu0 }
 0x2fe   :  { %v489_v28 = vpop.f32.mrf.mxu1 }
 0x2ff   :  { %494 = vst [vmem:[#allocation2 + $0x8] sm:$0xff] %v489_v28 }
 0x300   :  { %v768_v29 = vpop.f32.mrf.mxu1 }
 0x301   :  { %814 = shalt.err (!%p811_p9)
}
 0x302   :  { %506 = dma.vmem_to_hbm [thread:$0]  %s501_s25, 256, %s1184_s4, [#allocation3], %s830_s20, %s830_s20, %s831_s21  }
 0x303   :  { %823 = dma.done.wait [#allocation3], 256  }
 0x304   :  { %824 = vsyncadd [#allocation3], 4294967040 }
 0x305   :  { %825 = dma.done.wait [#allocation5], 256  }
 0x306   :  { %826 = vsyncadd [#allocation5], 4294967040 }
 0x307   :  { %525 = vsyncpa [#allocation3], 1 }
 0x308   :  { %526 = vsyncpa [#allocation5], 1 }

</bundles_post_ra>
